<compile_context>
chip_gen: v6e
topology: v6e:2x2x1
jax: 0.10.0
libtpu: 0.0.40
codegen_flags: <defaults>
</compile_context>

<pallas_src>
import jax
import jax.numpy as jnp
from jax import lax
from jax.experimental import pallas as pl
from jax.experimental.pallas import tpu as pltpu


def _id_conv1x1_kernel(x_ref, w_ref, o_ref):
    """out[0] = W @ x[0]  with x/o blocks (1, C, t_hw) and W (C, C)."""
    o_ref[0] = jnp.dot(
        w_ref[...], x_ref[0], preferred_element_type=jnp.float32
    ).astype(o_ref.dtype)


def identity_based_conv1x1(x_nchw, conv_weight, groups=1):
    """Forward of IdentityBasedConv1x1.

    x_nchw:      (N, C, H, W)
    conv_weight: (C, C//groups, 1, 1)   (the nn.Conv2d weight)
    """
    N, C, H, W = x_nchw.shape
    assert C % groups == 0
    input_dim = C // groups
    dtype = x_nchw.dtype
    itemsize = jnp.dtype(dtype).itemsize

    # ---- parameter glue (plain JAX, tiny): effective kernel = weight + id ----
    rows = jnp.arange(C)
    id_tensor = (jnp.arange(input_dim)[None, :] == (rows % input_dim)[:, None]
                 ).astype(conv_weight.dtype)                      # (C, C//g)
    kernel2d = conv_weight.reshape(C, input_dim) + id_tensor      # (C, C//g)

    # Expand to a block-diagonal dense (C, C) weight so the kernel issues a
    # single matmul and a single unmasked full-width store.
    co = jnp.arange(C)[:, None]
    ci = jnp.arange(C)[None, :]
    same_group = (co // input_dim) == (ci // input_dim)
    w_full = jnp.where(same_group,
                       kernel2d[co, ci % input_dim],
                       jnp.zeros((), conv_weight.dtype)).astype(dtype)  # (C, C)

    # ---- layout: NCHW -> (N, C, H*W).  Free reshape, no HBM transpose. ----
    HW = H * W
    x3d = x_nchw.reshape(N, C, HW)

    # ---- spatial tile from a VMEM budget (double-buffered in + out blocks) ----
    weight_bytes = C * C * itemsize
    io_budget = max((24 << 20) - 2 * weight_bytes, 2 << 20)
    t_hw = max(128, (io_budget // (4 * C * itemsize)) // 128 * 128)

    hw_pad = pl.cdiv(HW, 128) * 128
    t_hw = min(t_hw, hw_pad)
    hw_pad = pl.cdiv(hw_pad, t_hw) * t_hw
    if hw_pad != HW:
        x3d = jnp.pad(x3d, ((0, 0), (0, 0), (0, hw_pad - HW)))

    grid = (N, hw_pad // t_hw)

    out3d = pl.pallas_call(
        _id_conv1x1_kernel,
        out_shape=jax.ShapeDtypeStruct((N, C, hw_pad), dtype),
        grid_spec=pltpu.PrefetchScalarGridSpec(
            num_scalar_prefetch=0,
            grid=grid,
            in_specs=[
                pl.BlockSpec((1, C, t_hw), lambda n, p: (n, 0, p)),  # activations
                pl.BlockSpec((C, C), lambda n, p: (0, 0)),           # weight
            ],
            out_specs=pl.BlockSpec((1, C, t_hw), lambda n, p: (n, 0, p)),
        ),
        compiler_params=pltpu.CompilerParams(
            dimension_semantics=("parallel", "parallel"),
            vmem_limit_bytes=32 << 20,
        ),
    )(x3d, w_full)

    if hw_pad != HW:
        out3d = out3d[:, :, :HW]
    return out3d.reshape(N, C, H, W)
    # TODO(synk): optionally stream activations/weight in bf16 (f32 accumulate)
    # on v6e/v7x for ~2x HBM-bandwidth savings if the model tolerates it.


def _reference(x_nchw, conv_weight, groups):
    C = x_nchw.shape[1]
    input_dim = C // groups
    rows = jnp.arange(C)
    id_tensor = (jnp.arange(input_dim)[None, :] == (rows % input_dim)[:, None]
                 ).astype(conv_weight.dtype).reshape(C, input_dim, 1, 1)
    kernel = conv_weight + id_tensor
    return lax.conv_general_dilated(
        x_nchw, kernel, window_strides=(1, 1), padding="VALID",
        dimension_numbers=("NCHW", "OIHW", "NCHW"),
        feature_group_count=groups)


if __name__ == "__main__":
    key = jax.random.PRNGKey(0)
    k_x, k_w = jax.random.split(key)

    N, C, H, W = 2, 4, 16, 16
    groups = 2
    input_dim = C // groups

    x = jax.random.normal(k_x, (N, C, H, W), dtype=jnp.float32)

    # Module __init__: nn.init.zeros_(conv.weight) -> effective kernel == id.
    w_zeros = jnp.zeros((C, input_dim, 1, 1), dtype=jnp.float32)
    out = identity_based_conv1x1(x, w_zeros, groups=groups)
    jax.block_until_ready(out)
    ref = _reference(x, w_zeros, groups)
    assert jnp.allclose(out, ref, atol=1e-5, rtol=1e-5)
    # With zero weights the effective kernel is the identity -> output == input.
    assert jnp.allclose(out, x, atol=1e-5, rtol=1e-5)

    # Nonzero weight to exercise the (grouped, block-diagonal) matmul path.
    w_rand = 0.1 * jax.random.normal(k_w, (C, input_dim, 1, 1), dtype=jnp.float32)
    out2 = identity_based_conv1x1(x, w_rand, groups=groups)
    jax.block_until_ready(out2)
    ref2 = _reference(x, w_rand, groups)
    assert jnp.allclose(out2, ref2, atol=1e-4, rtol=1e-4)

    # groups=1 sanity check as well.
    w_g1 = 0.05 * jax.random.normal(k_w, (C, C, 1, 1), dtype=jnp.float32)
    out3 = identity_based_conv1x1(x, w_g1, groups=1)
    jax.block_until_ready(out3)
    ref3 = _reference(x, w_g1, groups=1)
    assert jnp.allclose(out3, ref3, atol=1e-4, rtol=1e-4)

    print("KERNEL_OK")
</pallas_src>

<mosaic_0001>
module attributes {stable_mosaic.version = 11 : i64} {
  func.func @_id_conv1x1_kernel(%arg0: i32, %arg1: i32, %arg2: memref<1x4x256xf32, #tpu.memory_space<vmem>>, %arg3: memref<4x4xf32, #tpu.memory_space<vmem>>, %arg4: memref<1x4x256xf32, #tpu.memory_space<vmem>>) attributes {dimension_semantics = [#tpu.dimension_semantics<parallel>, #tpu.dimension_semantics<parallel>], iteration_bounds = array<i64: 2, 1>, scalar_prefetch = 0 : i64, scratch_operands = 0 : i64, tpu.core_type = #tpu.core_type<tc>, window_params = [{transform_indices = @transform_0, window_bounds = array<i64: 1, 4, 256>}, {pipeline_mode = #tpu.pipeline_mode<synchronous>, transform_indices = @transform_1, window_bounds = array<i64: 4, 4>}, {transform_indices = @transform_2, window_bounds = array<i64: 1, 4, 256>}]} {
    %c0 = arith.constant 0 : index
    %c0_0 = arith.constant 0 : index
    %0 = vector.load %arg3[%c0, %c0_0] : memref<4x4xf32, #tpu.memory_space<vmem>>, vector<4x4xf32>
    %c0_1 = arith.constant 0 : index
    %c0_2 = arith.constant 0 : index
    %c0_3 = arith.constant 0 : index
    %1 = vector.load %arg2[%c0_1, %c0_2, %c0_3] : memref<1x4x256xf32, #tpu.memory_space<vmem>>, vector<1x4x256xf32>
    %2 = vector.shape_cast %1 : vector<1x4x256xf32> to vector<4x256xf32>
    %cst = arith.constant dense<0.000000e+00> : vector<4x256xf32>
    %3 = tpu.matmul %0, %2, %cst {dimension_numbers = #tpu.dot_dimension_numbers<[1], [0], [0], [1], [0, 0, 1, 1], [], []>} : vector<4x4xf32>, vector<4x256xf32>, vector<4x256xf32> -> vector<4x256xf32>
    %c0_4 = arith.constant 0 : index
    %c0_5 = arith.constant 0 : index
    %c0_6 = arith.constant 0 : index
    %4 = vector.load %arg4[%c0_4, %c0_5, %c0_6] : memref<1x4x256xf32, #tpu.memory_space<vmem>>, vector<1x4x256xf32>
    %5 = vector.shape_cast %4 : vector<1x4x256xf32> to vector<4x256xf32>
    %6 = vector.shape_cast %3 : vector<4x256xf32> to vector<1x4x256xf32>
    tpu.vector_store %arg4[%c0_4, %c0_5, %c0_6], %6 {strides = array<i32>} : memref<1x4x256xf32, #tpu.memory_space<vmem>>, vector<1x4x256xf32>,
    return
  }
  func.func @transform_0(%arg0: i32, %arg1: i32) -> (i32, i32, i32) {
    %c0_i32 = arith.constant 0 : i32
    %c0_i32_0 = arith.constant 0 : i32
    return %arg0, %c0_i32, %arg1 : i32, i32, i32
  }
  func.func @transform_1(%arg0: i32, %arg1: i32) -> (i32, i32) {
    %c0_i32 = arith.constant 0 : i32
    %c0_i32_0 = arith.constant 0 : i32
    %c0_i32_1 = arith.constant 0 : i32
    return %c0_i32, %c0_i32_0 : i32, i32
  }
  func.func @transform_2(%arg0: i32, %arg1: i32) -> (i32, i32, i32) {
    %c0_i32 = arith.constant 0 : i32
    %c0_i32_0 = arith.constant 0 : i32
    return %arg0, %c0_i32, %arg1 : i32, i32, i32
  }
}

</mosaic_0001>

<bundles_post_ra>
// kernel: tpu_custom_call.1
= control target key start
LH: loop header
LB: loop body
LE: loop exit
PB: predicated region body
PF: predicated region fallthrough
CT: control target
= control target key end

     0   :  { %7 = vsyncpa [#allocation3], 0  ;;  %s810_s0 = inlined_call_operand.hbm [shape: f32[2,4,256], index: 0, kind: input, shape index: {}]   ;;  %s811_s1 = inlined_call_operand.hbm [shape: f32[4,4], index: 1, kind: input, shape index: {}]   ;;  %s812_s2 = inlined_call_operand.hbm [shape: f32[2,4,256], index: 2, kind: output, shape index: {}]  }
   0x1   :  { %9 = vsyncpa [#allocation3 + $0x1], 0 }
   0x2   :  { %10 = vsyncpa [#allocation6], 0 }
   0x3   :  { %11 = vsyncpa [#allocation4], 0 }
   0x4   :  { %13 = vsyncpa [#allocation4 + $0x1], 0  ;;  %s649_s9 = smov 0   ;;  %s651_s10 = smov 0  }
   0x5   :  { %s653_s11 = smov 0   ;;  %s655_s12 = smov 0  }
   0x6   :  { %s657_s13 = smov 0   ;;  %s659_s14 = smov 0  }
   0x7 LB: > { %s393_s15 = sadd.s32 4294967295, %s628_s14   ;;  %s394_s16 = sadd.s32 4294967294, %s628_s14   ;;  %s628_s14 = sphi %s659_s14, %s19_s14   ;;  %s624_s13 = sphi %s657_s13, %s829_s13   ;;  %s620_s12 = sphi %s655_s12, %s828_s12   ;;  %s616_s11 = sphi %s653_s11, %s827_s11   ;;  %s612_s10 = sphi %s651_s10, %s826_s10   ;;  %s608_s9 = sphi %s649_s9, %s825_s9  }
   0x8   : > { %p53_p0 = scmp.ne.s32.totalorder %s612_s10, %s608_s9  ;;  %p683_p1 = scmp.eq.s32.totalorder %s393_s15, 0 }
   0x9   : > { %p687_p2 = scmp.eq.s32.totalorder %s393_s15, 1  ;;  %p106_p3 = scmp.eq.s32.totalorder %s394_s16, 1 }
   0xa   : > { %p693_p4 = por %p683_p1, %p53_p0  ;;  %p395_p5 = scmp.ge.s32.totalorder %s628_s14, 1 }
   0xb   : > { %p698_p6 = por %p106_p3, %p53_p0  ;;  %p113_p7 = scmp.lt.s32.totalorder %s628_s14, 3 }
   0xc   : > { %s816_s19 = scalar_select %p693_p4, 1, 0 }
   0xd   : > { %s817_s20 = scalar_select %p698_p6, 1, 0 }
   0xe   : > { %p703_p8 = pnand %p395_p5, %p113_p7  ;;  %s630_s22 = smov [#allocation5]  }
   0xf   : > { %s126_s23 = sshll.u32 %s630_s22, 4  ;;  %s31_s25 = sadd.s32 1, %s624_s13  ;;  %s127_s23 = int_to_ptr.vmem [resolvable:$true] %s126_s23 }
  0x10   : > { %p423_p10 = pneg %p703_p8  ;;  %s40_s26 = sadd.s32 1, %s616_s11 }
  0x11   : > { %p33_p12 = scmp.ge.s32.totalorder %s31_s25, 2  ;;  %s501_s27 = scalar_lea.vmem %s127_s23, 64 }
  0x12   : > { %p712_p11 = pnand %p423_p10, %p683_p1  ;;  %p502_p0 = scmp.ne.s32.totalorder %s127_s23, %s501_s27 }
  0x13   : > { %p509_p7 = scmp.lt.s32.totalorder %s127_s23, %s127_s23  ;;  %p510_p6 = scmp.lt.s32.totalorder %s501_s27, %s501_s27 }
  0x14   : > { %p492_p13 = pneg %p712_p11 }
  0x15   : > { %p511_p9 = por %p510_p6, %p509_p7 }
  0x16   : > { %p504_p3 = pnand %p502_p0, %p492_p13 }
  0x18   : > { %p505_p5 = pneg %p504_p3 }
  0x1a   : > { %p512_p4 = pnand %p511_p9, %p505_p5 }
  0x1c   : > { %515 = shalt.err (!%p512_p4)
}
  0x1d   : > { %426 = dma.hbm_to_vmem [thread:$0]  (!%p712_p11), %s811_s1, 64, %s127_s23, [#allocation6]  }
  0x1e   : > { %s831_s25 = smov (%p33_p12, %s31_s25), 0  ;;  %p47_p6 = scmp.ne.s32.totalorder %s616_s11, %s612_s10 }
  0x1f   : > { %p48_p4 = scmp.eq.s32.totalorder %s628_s14, 0  ;;  %s35_s30 = ssub.s32 %s624_s13, %s831_s25 }
  0x20   : > { %p436_p9 = scmp.lt.s32.totalorder %s628_s14, 2  ;;  %p38_p10 = scmp.eq.s32.totalorder %s35_s30, 0 }
  0x21   : > { %p49_p13 = por %p48_p4, %p47_p6  ;;  %p735_p0 = por %p687_p2, %p47_p6 }
  0x22   : > { %s137_s4 = sand.u32 1, %s616_s11   ;;  %s413_s7 = sshll.u32 %s624_s13, 7 }
  0x23   : > { %s741_s5 = scalar_select %p38_p10, %s616_s11, %s40_s26  }
  0x24   : > { %s398_s6 = sshll.u32 %s137_s4, 3  ;;  %s149_s16 = scalar_lea.hbm %s810_s0, %s413_s7 }
  0x25   : > { %s141_s22 = scalar_lea.vmem [#allocation2], %s398_s6  ;;  %p747_p11 = pnand %p436_p9, %p49_p13 }
  0x26   : > { %s151_s23 = sshll.u32 %s141_s22, 4  ;;  %s138_s18 = scalar_lea.sflag [#allocation3], %s137_s4  ;;  %s152_s23 = int_to_ptr.vmem [resolvable:$true] %s151_s23 }
  0x27   : > { %p518_p2 = pneg %p747_p11  ;;  %s529_s27 = scalar_lea.vmem %s152_s23, 128 }
  0x28   : > { %p530_p12 = scmp.ne.s32.totalorder %s152_s23, %s529_s27  ;;  %s631_s26 = smov [#allocation2]  }
  0x29   : > { %s534_s28 = sshll.u32 %s631_s26, 4  ;;  %s535_s28 = int_to_ptr.vmem [resolvable:$false] %s534_s28 }
  0x2a   : > { %p532_p3 = pnand %p530_p12, %p518_p2  ;;  %s536_s29 = scalar_lea.vmem %s535_s28, 256 }
  0x2b   : > { %p537_p7 = scmp.lt.s32.totalorder %s152_s23, %s535_s28  ;;  %p538_p6 = scmp.lt.s32.totalorder %s536_s29, %s529_s27 }
  0x2c   : > { %p533_p5 = pneg %p532_p3 }
  0x2d   : > { %p539_p4 = por %p538_p6, %p537_p7 }
  0x2f   : > { %p540_p10 = pnand %p539_p4, %p533_p5 }
  0x31   : > { %543 = shalt.err (!%p540_p10)
}
  0x32   : > { %430 = dma.hbm_to_vmem [thread:$0]  (!%p747_p11), %s149_s16, 128, %s152_s23, %s138_s18  }
  0x33   : > { %160 = sbr.rel (%p703_p8) target bundleno = 274 (0x112), region = 28  ;;  %s758_s30 = sand.u32 (!%p703_p8), 1, %s612_s10  }
  0x34   : > { %s402_s4 = sshll.u32 (!%p703_p8), %s758_s30, 3  ;;  %s163_s6 = scalar_lea.sflag (!%p703_p8), [#allocation3], %s758_s30 }
  0x35   : > { %s166_s7 = scalar_lea.vmem (!%p703_p8), [#allocation2], %s402_s4  ;;  %p822_p9 = scmp.ne.s32.totalorder (!%p703_p8), %s816_s19, 0 }
  0x38   : > { %595 = dma.done.wait (%p822_p9), %s163_s6, 128  }
  0x39   : > { %597 = vsyncadd (%p822_p9), %s163_s6, 4294967168 }
  0x3a   : > { %599 = dma.done.wait (%p683_p1), [#allocation6], 64  }
  0x3b   : > { %601 = vsyncadd (%p683_p1), [#allocation6], 4294967232  ;;  %v632_v0 = vmov 0.0   ;;  %v194_v1 = vld [vmem:[%s166_s7] sm:$0xff]  ;;  %vm201_vm0 = vcmask 1043456   ;;  %vm197_vm1 = vcmask 31744  }
  0x3c   : > { %270 = vmatprep.mubr.f32.mxu0 %v632_v0  ;;  %v196_v2 = vcombine.high %v194_v1, %v194_v1  ;;  %v193_v3 = vld [vmem:[#allocation5] sm:$0xf]  ;;  %s414_s19 = sshll.u32 %s620_s12, 7  ;;  %s190_s21 = scalar_lea.vmem [#allocation7], %s402_s4 }
  0x3d   : > { %s299_s8 = sshll.u32 %s190_s21, 4  ;;  %s297_s16 = scalar_lea.hbm %s812_s2, %s414_s19  ;;  %s300_s8 = int_to_ptr.vmem [resolvable:$true] %s299_s8 }
  0x3e   : > { %405 = vmatprep.subr.msk.mxu0 %vm201_vm0, %v196_v2  ;;  %s283_s22 = scalar_lea.sflag [#allocation4], %s758_s30  ;;  %s544_s23 = scalar_lea.vmem %s300_s8, 128 }
  0x3f   : > { %406 = vmatpush1.msk.msra.mxu0 %vm201_vm0, %v194_v1  ;;  %p545_p1 = scmp.ne.s32.totalorder %s300_s8, %s544_s23  ;;  %s633_s24 = smov [#allocation7]  }
  0x40   : > { %407 = vmatmul.mubr.msk.f32.vlgmr.msra.gmra.mxu0 %vm197_vm1, %v193_v3  ;;  %s548_s18 = sshll.u32 %s633_s24, 4  ;;  %s549_s18 = int_to_ptr.vmem [resolvable:$false] %s548_s18 }
  0x41   : > { %p546_p8 = pnand %p545_p1, %p735_p0  ;;  %s550_s12 = scalar_lea.vmem %s549_s18, 256 }
  0x42   : > { %p551_p11 = scmp.lt.s32.totalorder %s300_s8, %s549_s18  ;;  %p552_p2 = scmp.lt.s32.totalorder %s550_s12, %s544_s23 }
  0x43   : > { %p547_p13 = pneg %p546_p8 }
  0x44   : > { %p553_p12 = por %p552_p2, %p551_p11 }
  0x46   : > { %p554_p3 = pnand %p553_p12, %p547_p13 }
 0x100   : > { %v272_v4 = vpop.f32.mrf.mxu0 }
 0x102   : > { %v274_v5 = vpop.f32.mrf.mxu0 }
 0x103   : > { %v279_v6 = vcombine.low %v272_v4, %v274_v5 }
 0x105   : > { %281 = vst [vmem:[%s190_s21] sm:$0xff] %v279_v6 }
 0x106   : > { %557 = shalt.err (!%p554_p3)
}
 0x107   : > { %s558_s27 = scalar_lea.hbm %s297_s16, 128  ;;  %s562_s29 = scalar_lea.hbm %s812_s2, 256 }
 0x108   : > { %p559_p5 = scmp.ne.s32.totalorder %s297_s16, %s558_s27  ;;  %p563_p4 = scmp.lt.s32.totalorder %s297_s16, %s812_s2 }
 0x109   : > { %p564_p10 = scmp.lt.s32.totalorder %s562_s29, %s558_s27 }
 0x10a   : > { %p560_p7 = pnand %p559_p5, %p735_p0 }
 0x10b   : > { %p565_p9 = por %p564_p10, %p563_p4 }
 0x10c   : > { %p561_p6 = pneg %p560_p7 }
 0x10e   : > { %p566_p1 = pnand %p565_p9, %p561_p6 }
 0x110   : > { %569 = shalt.err (!%p566_p1)
}
 0x111   : > { %421 = dma.vmem_to_hbm [thread:$0]  (%p735_p0), %s300_s8, 128, %s297_s16, %s283_s22  }
 0x112 PF: > { %s311_s6 = sand.u32 1, %s608_s9   ;;  %p823_p8 = scmp.ne.s32.totalorder %s817_s20, 0 }
 0x113   : > { %p824_p13 = scmp.ge.s32.totalorder %s628_s14, 2  ;;  %s312_s7 = scalar_lea.sflag [#allocation4], %s311_s6 }
 0x115   : > { %p432_p11 = pnand %p824_p13, %p823_p8 }
 0x117   : > { %p433_p2 = pneg %p432_p11 }
 0x119   : > { %603 = dma.done.wait (%p433_p2), %s312_s7, 128  }
 0x11a   : > { %605 = vsyncadd (%p433_p2), %s312_s7, 4294967168  ;;  %s19_s14 = sadd.s32 1, %s628_s14   ;;  %s825_s9 = smov %s612_s10 }
 0x11b   : > { %p16_p12 = scmp.ge.s32.totalorder %s19_s14, 4   ;;  %s826_s10 = smov %s616_s11 }
 0x11c   : > { %s827_s11 = smov %s741_s5  ;;  %s828_s12 = smov %s624_s13 }
 0x11d   : > { %s829_s13 = smov %s831_s25  ;;  %18 = sbr.rel (!%p16_p12) target bundleno = 7 (0x7), region = 77 }
 0x122   :  { %317 = vsyncpa [#allocation3], 1 }
 0x123   :  { %319 = vsyncpa [#allocation3 + $0x1], 1 }
 0x124   :  { %320 = vsyncpa [#allocation6], 1 }
 0x125   :  { %321 = vsyncpa [#allocation4], 1 }
 0x126   :  { %323 = vsyncpa [#allocation4 + $0x1], 1 }

</bundles_post_ra>
